<compile_context>
chip_gen: v7x
topology: tpu7x:2x2x1
jax: 0.10.0
libtpu: 0.0.40
codegen_flags: <defaults>
</compile_context>

<pallas_src>
import numpy as np
import jax
import jax.numpy as jnp
from jax.experimental import pallas as pl
from jax.experimental.pallas import tpu as pltpu


def _round_up(x, m):
    return ((x + m - 1) // m) * m


def _vmem_capacity_bytes():
    try:
        info = pltpu.get_tpu_info()
        cap = getattr(info, "vmem_capacity_bytes", None)
        if cap:
            return int(cap)
    except Exception:
        pass
    return None


def _compiler_params(sem, vmem_limit):
    if vmem_limit is None:
        return pltpu.CompilerParams(dimension_semantics=sem)
    return pltpu.CompilerParams(dimension_semantics=sem,
                                vmem_limit_bytes=vmem_limit)


# ---------------------------------------------------------------------------
# Pallas kernels
# ---------------------------------------------------------------------------

def _linear_kernel(x_ref, w_ref, b_ref, o_ref):
    o_ref[...] = (jnp.dot(x_ref[...].astype(jnp.bfloat16),
                          w_ref[...].astype(jnp.bfloat16),
                          preferred_element_type=jnp.float32)
                  + b_ref[...]).astype(o_ref.dtype)


def pallas_linear(x, w, b, tm_max=512, vmem_limit=None):
    """y = x @ w + b ; bf16 MXU operands, f32 accumulate, large M tiles."""
    M, Kin = x.shape
    N = w.shape[1]
    tm = min(tm_max, _round_up(M, 8))
    Mp = _round_up(M, tm)
    xp = jnp.pad(x, ((0, Mp - M), (0, 0))) if Mp != M else x
    out = pl.pallas_call(
        _linear_kernel,
        out_shape=jax.ShapeDtypeStruct((Mp, N), jnp.float32),
        grid=(Mp // tm,),
        in_specs=[pl.BlockSpec((tm, Kin), lambda i: (i, 0)),
                  pl.BlockSpec((Kin, N), lambda i: (0, 0)),
                  pl.BlockSpec((1, N), lambda i: (0, 0))],
        out_specs=pl.BlockSpec((tm, N), lambda i: (i, 0)),
        compiler_params=_compiler_params(("parallel",), vmem_limit),
    )(xp, w, b.reshape(1, N))
    return out[:M]


def _out_proj_kernel(x_ref, w_ref, b_ref, r_ref, o_ref):
    o_ref[...] = (jnp.dot(x_ref[...].astype(jnp.bfloat16),
                          w_ref[...].astype(jnp.bfloat16),
                          preferred_element_type=jnp.float32)
                  + b_ref[...] + r_ref[...]).astype(o_ref.dtype)


def pallas_out_proj_residual(x, w, b, residual, tm_max=512, vmem_limit=None):
    """y = x @ w + b + residual (fused output projection + residual add)."""
    M, E = x.shape
    tm = min(tm_max, _round_up(M, 8))
    Mp = _round_up(M, tm)
    pad = Mp - M
    xp = jnp.pad(x, ((0, pad), (0, 0))) if pad else x
    rp = jnp.pad(residual, ((0, pad), (0, 0))) if pad else residual
    out = pl.pallas_call(
        _out_proj_kernel,
        out_shape=jax.ShapeDtypeStruct((Mp, E), jnp.float32),
        grid=(Mp // tm,),
        in_specs=[pl.BlockSpec((tm, E), lambda i: (i, 0)),
                  pl.BlockSpec((E, E), lambda i: (0, 0)),
                  pl.BlockSpec((1, E), lambda i: (0, 0)),
                  pl.BlockSpec((tm, E), lambda i: (i, 0))],
        out_specs=pl.BlockSpec((tm, E), lambda i: (i, 0)),
        compiler_params=_compiler_params(("parallel",), vmem_limit),
    )(xp, w, b.reshape(1, E), rp)
    return out[:M]


def _sca_attn_kernel(q_ref, kexp_ref, v_ref, wq_ref, bq_ref, bv_ref, o_ref):
    # q    [1, tnq, E]     f32   (rebatched queries, heads folded into lanes)
    # kexp [1, E, h*K]     f32   (sampled keys, W_k + b_k applied, expanded so
    #                             column k*h+hh holds head hh's key k)
    # v    [1, tnq, K, E]  bf16  (sampled values, W_v pre-applied, E-last)
    # wq   [E, E] block-diagonal W_q ; bq/bv [1, E] head-tiled biases
    _, tnq, E = q_ref.shape
    HK = kexp_ref.shape[2]
    K = v_ref.shape[2]
    h = HK // K
    d = E // h

    # Q projection: one lane-dense MXU matmul over the full E contraction.
    qp = (jnp.dot(q_ref[0].astype(jnp.bfloat16),
                  wq_ref[...].astype(jnp.bfloat16),
                  preferred_element_type=jnp.float32) + bq_ref[...])   # [tnq,E]

    # Per-head logits via the expanded key matrix (zeros off the head block).
    logits = jnp.dot(qp.astype(jnp.bfloat16),
                     kexp_ref[0].astype(jnp.bfloat16),
                     preferred_element_type=jnp.float32)               # [tnq,HK]

    # Softmax over K (sublane reductions on [tnq, K, h]).
    l3 = logits.reshape(tnq, K, h)
    m = jnp.max(l3, axis=1, keepdims=True)
    e3 = jnp.exp(l3 - m)
    s = jnp.sum(e3, axis=1, keepdims=True)
    w3 = e3 * pl.reciprocal(s, approx=True)                            # [tnq,K,h]

    # Broadcast each head's weight across its d lanes (static lane concat),
    # then a single lane-dense weighted sum over K.
    wb = jnp.concatenate(
        [jnp.broadcast_to(w3[:, :, hh:hh + 1], (tnq, K, d)) for hh in range(h)],
        axis=-1)                                                       # [tnq,K,E]
    acc = jnp.sum(wb * v_ref[0].astype(jnp.float32), axis=1)           # [tnq,E]

    # b_v is added once after the weighted sum (softmax weights sum to 1).
    o_ref[0] = (acc + bv_ref[...]).astype(o_ref.dtype)


def pallas_sca_attention(q, kexp, v, wq_bd, bq_t, bv_t, tnq, vmem_limit):
    bc, nq_p, E = q.shape
    K = v.shape[2]
    HK = kexp.shape[2]
    return pl.pallas_call(
        _sca_attn_kernel,
        out_shape=jax.ShapeDtypeStruct((bc, nq_p, E), jnp.float32),
        grid=(bc, nq_p // tnq),
        in_specs=[
            pl.BlockSpec((1, tnq, E), lambda i, j: (i, j, 0)),
            pl.BlockSpec((1, E, HK), lambda i, j: (i, 0, 0)),
            pl.BlockSpec((1, tnq, K, E), lambda i, j: (i, j, 0, 0)),
            pl.BlockSpec((E, E), lambda i, j: (0, 0)),
            pl.BlockSpec((1, E), lambda i, j: (0, 0)),
            pl.BlockSpec((1, E), lambda i, j: (0, 0)),
        ],
        out_specs=pl.BlockSpec((1, tnq, E), lambda i, j: (i, j, 0)),
        compiler_params=_compiler_params(("parallel", "parallel"), vmem_limit),
    )(q, kexp, v, wq_bd, bq_t, bv_t)


# ---------------------------------------------------------------------------
# JAX glue
# ---------------------------------------------------------------------------

def grid_sample_multihead(img, grid):
    """Per-head channels-last bilinear sampling, matching
    F.grid_sample(mode='bilinear', padding_mode='zeros', align_corners=False).
    img: [N, H, W, h, d], grid: [N, Q, h, 2] (x, y) in [-1, 1] -> [N, Q, h, d].
    """
    # TODO(synk): data-dependent bilinear gather stays in XLA; moving it into
    # the Pallas kernel would need scalar-prefetched indices + manual DMA.
    N, H, W, h, d = img.shape
    x = grid[..., 0]
    y = grid[..., 1]
    ix = ((x + 1.0) * W - 1.0) / 2.0
    iy = ((y + 1.0) * H - 1.0) / 2.0
    ix0 = jnp.floor(ix)
    iy0 = jnp.floor(iy)
    ix1 = ix0 + 1.0
    iy1 = iy0 + 1.0
    wx1 = ix - ix0
    wx0 = 1.0 - wx1
    wy1 = iy - iy0
    wy0 = 1.0 - wy1
    flat = img.reshape(N, H * W, h, d)

    def corner(ixc, iyc, w):
        valid = ((ixc >= 0) & (ixc <= W - 1) & (iyc >= 0) & (iyc <= H - 1))
        xi = jnp.clip(ixc, 0, W - 1).astype(jnp.int32)
        yi = jnp.clip(iyc, 0, H - 1).astype(jnp.int32)
        lin = (yi * W + xi)[..., None]                       # [N, Q, h, 1]
        vals = jnp.take_along_axis(flat, lin, axis=1)        # [N, Q, h, d]
        return vals * (valid.astype(img.dtype) * w)[..., None]

    return (corner(ix0, iy0, wx0 * wy0) + corner(ix1, iy0, wx1 * wy0)
            + corner(ix0, iy1, wx0 * wy1) + corner(ix1, iy1, wx1 * wy1))


def build_rebatch_plan(bev_mask_np):
    """Host-side, data-dependent rebatch plan (outside the device forward)."""
    # TODO(synk): nonzero()/max_len are inherently dynamic-shape; computed on
    # host once per bev_mask and passed into the (otherwise device-only) forward.
    num_cams = bev_mask_np.shape[0]
    indices = [np.nonzero(bev_mask_np[i, 0].sum(-1))[0] for i in range(num_cams)]
    max_len = max(max(len(ix) for ix in indices), 1)
    idx = np.zeros((num_cams, max_len), np.int32)
    valid = np.zeros((num_cams, max_len), np.float32)
    for i, ix in enumerate(indices):
        idx[i, :len(ix)] = ix
        valid[i, :len(ix)] = 1.0
    return jnp.asarray(idx), jnp.asarray(valid)


def init_params(key, cfg):
    E = cfg['embed_dims']
    h = cfg['num_heads']
    d = E // h
    F = cfg['num_levels'] * cfg['num_points'] * cfg['num_zAnchors'] * 2
    ks = jax.random.split(key, 10)
    s = 0.1
    # weights stored as [in, out]; y = x @ W + b
    return {
        'W_q': s * jax.random.normal(ks[0], (d, d), jnp.float32),
        'b_q': s * jax.random.normal(ks[1], (d,), jnp.float32),
        'W_k': s * jax.random.normal(ks[2], (d, d), jnp.float32),
        'b_k': s * jax.random.normal(ks[3], (d,), jnp.float32),
        'W_v': s * jax.random.normal(ks[4], (d, d), jnp.float32),
        'b_v': s * jax.random.normal(ks[5], (d,), jnp.float32),
        'W_off': s * jax.random.normal(ks[6], (d, F), jnp.float32),
        'b_off': s * jax.random.normal(ks[7], (F,), jnp.float32),
        'W_o': s * jax.random.normal(ks[8], (E, E), jnp.float32),
        'b_o': s * jax.random.normal(ks[9], (E,), jnp.float32),
    }


def spatial_cross_attention_forward(params, cfg, query, key, value,
                                    reference_points, spatial_shapes_np,
                                    reference_points_cam, bev_mask,
                                    rebatch_idx, rebatch_valid):
    num_cams = cfg['num_cams']
    Z = cfg['num_zAnchors']
    E = cfg['embed_dims']
    h = cfg['num_heads']
    L = cfg['num_levels']
    P = cfg['num_points']
    d = E // h
    PZ = P * Z
    K = L * PZ
    HK = h * K

    residual = query
    bs, num_query, _ = query.shape
    num_key = key.shape[2]
    num_value = value.shape[2]
    max_len = int(rebatch_idx.shape[1])
    idx = rebatch_idx
    valid = rebatch_valid

    # ---- per-generation VMEM budget ----
    cap = _vmem_capacity_bytes()
    if cap is None:
        budget = 16 * 1024 * 1024
        vmem_limit = None
    else:
        budget = min(int(cap * 0.4), 48 * 1024 * 1024)     # live-VMEM budget
        vmem_limit = int(min(cap * 0.75, 96 * 1024 * 1024))

    # ---- vectorized rebatch gather (device) ----
    q_gather = jnp.take(query, idx.reshape(-1), axis=1)
    query_rebatch = (q_gather.reshape(bs, num_cams, max_len, E)
                     * valid[None, :, :, None])
    ref_gather = jnp.take_along_axis(
        reference_points_cam, idx[:, None, :, None, None], axis=2)
    ref_rebatch = (jnp.transpose(ref_gather, (1, 0, 2, 3, 4))
                   * valid[None, :, :, None, None])

    bc = bs * num_cams
    query_rebatch = query_rebatch.reshape(bc, max_len, E)   # bs-major flatten
    ref_rebatch = ref_rebatch.reshape(bc, max_len, Z, 2)

    # ---- nq tile sized from the VMEM budget (bf16 V block x2 buffers + f32
    # in-kernel temporaries), queries padded to a tile multiple ----
    row_bytes = K * E * 16 + E * 16 + HK * 8 + 256
    fixed_bytes = (E * E + E * HK) * 8 + (1 << 20)
    usable = max(budget - fixed_bytes, 8 * row_bytes)
    cap_rows = max(8, (usable // row_bytes) // 8 * 8)
    tnq = min(_round_up(max_len, 8), min(cap_rows, 2048))
    nq_p = _round_up(max_len, tnq)
    pad_n = nq_p - max_len
    if pad_n:
        query_rebatch = jnp.pad(query_rebatch, ((0, 0), (0, pad_n), (0, 0)))
        ref_rebatch = jnp.pad(ref_rebatch,
                              ((0, 0), (0, pad_n), (0, 0), (0, 0)))

    # NOTE: faithful to torch .view on [num_cams, bs, ...] (cams-major flatten)
    key_f = key.reshape(bc, num_key, E)
    value_f = value.reshape(bc, num_value, E)

    # ---- pre-project K/V feature maps with block-diagonal per-head weights
    # (no bias: bilinear sampling is linear, biases added after sampling) ----
    eye_h = jnp.eye(h, dtype=jnp.float32)
    wq_bd = jnp.kron(eye_h, params['W_q'])
    wk_bd = jnp.kron(eye_h, params['W_k'])
    wv_bd = jnp.kron(eye_h, params['W_v'])
    zeros_E = jnp.zeros((E,), jnp.float32)
    key_proj = pallas_linear(key_f.reshape(bc * num_key, E), wk_bd, zeros_E,
                             vmem_limit=vmem_limit).reshape(bc, num_key, E)
    value_proj = pallas_linear(value_f.reshape(bc * num_value, E), wv_bd,
                               zeros_E, vmem_limit=vmem_limit
                               ).reshape(bc, num_value, E)

    ss = np.asarray(spatial_shapes_np).astype(np.int64)              # [L, 2]
    offset_normalizer = jnp.asarray(np.stack([ss[:, 1], ss[:, 0]], -1),
                                    jnp.float32)                     # [L, 2]

    # ---- sampling offsets: M = bc*nq*h rows against the original [d,F] weight
    off = pallas_linear(query_rebatch.reshape(bc * nq_p * h, d),
                        params['W_off'], params['b_off'],
                        vmem_limit=vmem_limit)
    off = off.reshape(bc, nq_p, h, L, PZ, 2)
    off = off / offset_normalizer[None, None, None, :, None, :]
    off = off.reshape(bc, nq_p, h, L, P, Z, 2)
    sampling_locations = ref_rebatch[:, :, None, None, None, :, :] + off
    sampling_locations = sampling_locations.reshape(bc, nq_p, h, L, PZ, 2)
    sampling_grids = 2.0 * sampling_locations - 1.0

    # ---- per-level multi-head bilinear sampling of the pre-projected K/V;
    # sampled V is staged in HBM as bf16 with heads folded into the lane dim --
    k_lvl, v_lvl = [], []
    start = 0
    for level in range(L):
        H_, W_ = int(ss[level, 0]), int(ss[level, 1])
        hw = H_ * W_
        key_l = key_proj[:, start:start + hw].reshape(bc, H_, W_, h, d)
        value_l = value_proj[:, start:start + hw].reshape(bc, H_, W_, h, d)
        start += hw

        # keys: only query 0's grid (reference semantics)
        grid_k = jnp.transpose(sampling_grids[:, 0, :, level], (0, 2, 1, 3))
        # values: all queries, (nq, PZ)-major then heads
        grid_v = jnp.transpose(sampling_grids[:, :, :, level],
                               (0, 1, 3, 2, 4)).reshape(bc, nq_p * PZ, h, 2)

        k_lvl.append(grid_sample_multihead(key_l, grid_k))       # [bc,PZ,h,d]
        v_lvl.append(grid_sample_multihead(value_l, grid_v)
                     .astype(jnp.bfloat16))                      # [bc,nq*PZ,h,d]

    k_samp = jnp.stack(k_lvl, axis=1).reshape(bc, K, E)           # f32
    v_samp = jnp.stack(
        [vl.reshape(bc, nq_p, PZ, h, d) for vl in v_lvl], axis=2
    ).reshape(bc, nq_p, K, E)                                     # bf16

    # add b_k after sampling; build the expanded per-head key matrix [bc,E,h*K]
    k_samp = k_samp + jnp.tile(params['b_k'], h)[None, None, :]
    k4 = k_samp.reshape(bc, K, h, d)
    kexp = jnp.einsum('bkhd,hg->bhdkg', k4, eye_h).reshape(bc, E, HK)

    bq_t = jnp.tile(params['b_q'], h).reshape(1, E)
    bv_t = jnp.tile(params['b_v'], h).reshape(1, E)

    # ---- fused Q projection + per-head logits + softmax + weighted sum ----
    attn_out = pallas_sca_attention(query_rebatch, kexp, v_samp, wq_bd,
                                    bq_t, bv_t, tnq, vmem_limit)  # [bc,nq_p,E]

    attention = attn_out[:, :max_len].reshape(bs, num_cams, max_len, E)
    attention = attention * valid[None, :, :, None]

    # ---- single vectorized scatter-add back to the query slots ----
    slots = jnp.zeros((bs, num_query, E), jnp.float32)
    slots = slots.at[:, idx.reshape(-1), :].add(
        attention.reshape(bs, num_cams * max_len, E))

    count = (jnp.sum(bev_mask, axis=-1) > 0).astype(jnp.float32)
    count = jnp.transpose(count, (1, 2, 0)).sum(-1)               # [bs,num_query]
    count = jnp.maximum(count, 1.0)
    slots = slots / count[..., None]

    # ---- output projection + residual (Pallas); dropout = identity (eval) ----
    out = pallas_out_proj_residual(slots.reshape(bs * num_query, E),
                                   params['W_o'], params['b_o'],
                                   residual.reshape(bs * num_query, E),
                                   vmem_limit=vmem_limit)
    return out.reshape(bs, num_query, E)


# ---------------------------------------------------------------------------
# main
# ---------------------------------------------------------------------------

if __name__ == "__main__":
    cfg = dict(num_cams=2, num_zAnchors=2, embed_dims=32, num_heads=2,
               num_levels=2, num_points=2, dropout=0.1)
    bs, num_query = 2, 8
    ss_np = np.array([[4, 4], [2, 2]], np.int32)       # [num_levels, 2] = (H, W)
    num_key = int((ss_np[:, 0] * ss_np[:, 1]).sum())   # 20

    root = jax.random.PRNGKey(0)
    kq, kk, kv, kr, krc, km, kp = jax.random.split(root, 7)
    query = jax.random.normal(kq, (bs, num_query, cfg['embed_dims']), jnp.float32)
    key = jax.random.normal(kk, (cfg['num_cams'], bs, num_key, cfg['embed_dims']),
                            jnp.float32)
    value = jax.random.normal(kv, (cfg['num_cams'], bs, num_key, cfg['embed_dims']),
                              jnp.float32)
    reference_points = jax.random.uniform(kr, (bs, num_query, 4), jnp.float32)
    reference_points_cam = jax.random.uniform(
        krc, (cfg['num_cams'], bs, num_query, cfg['num_zAnchors'], 2), jnp.float32)
    bev_mask = jax.random.bernoulli(
        km, 0.6, (cfg['num_cams'], bs, num_query, cfg['num_zAnchors']))
    bev_mask = bev_mask.at[:, :, 0, 0].set(True)   # each camera sees >= 1 valid query
    params = init_params(kp, cfg)

    # host-side, data-dependent rebatch plan computed once outside the forward
    idx, valid = build_rebatch_plan(np.asarray(jax.device_get(bev_mask)))

    out = spatial_cross_attention_forward(params, cfg, query, key, value,
                                          reference_points, ss_np,
                                          reference_points_cam, bev_mask,
                                          idx, valid)
    out = jax.block_until_ready(out)
    assert out.shape == (bs, num_query, cfg['embed_dims'])
    assert np.all(np.isfinite(np.asarray(out)))
    print("KERNEL_OK")
</pallas_src>

<mosaic_0001>
module attributes {stable_mosaic.version = 11 : i64} {
  func.func @_linear_kernel(%arg0: i32, %arg1: memref<80x32xf32, #tpu.memory_space<vmem>>, %arg2: memref<32x32xf32, #tpu.memory_space<vmem>>, %arg3: memref<1x32xf32, #tpu.memory_space<vmem>>, %arg4: memref<80x32xf32, #tpu.memory_space<vmem>>) attributes {dimension_semantics = [#tpu.dimension_semantics<parallel>], iteration_bounds = array<i64: 1>, scalar_prefetch = 0 : i64, scratch_operands = 0 : i64, tpu.core_type = #tpu.core_type<tc>, window_params = [{transform_indices = @transform_0, window_bounds = array<i64: 80, 32>}, {pipeline_mode = #tpu.pipeline_mode<synchronous>, transform_indices = @transform_1, window_bounds = array<i64: 32, 32>}, {pipeline_mode = #tpu.pipeline_mode<synchronous>, transform_indices = @transform_2, window_bounds = array<i64: 1, 32>}, {transform_indices = @transform_3, window_bounds = array<i64: 80, 32>}]} {
    %c0 = arith.constant 0 : index
    %c0_0 = arith.constant 0 : index
    %0 = vector.load %arg1[%c0, %c0_0] : memref<80x32xf32, #tpu.memory_space<vmem>>, vector<80x32xf32>
    %1 = arith.truncf %0 : vector<80x32xf32> to vector<80x32xbf16>
    %c0_1 = arith.constant 0 : index
    %c0_2 = arith.constant 0 : index
    %2 = vector.load %arg2[%c0_1, %c0_2] : memref<32x32xf32, #tpu.memory_space<vmem>>, vector<32x32xf32>
    %3 = arith.truncf %2 : vector<32x32xf32> to vector<32x32xbf16>
    %cst = arith.constant dense<0.000000e+00> : vector<80x32xf32>
    %4 = tpu.matmul %1, %3, %cst {dimension_numbers = #tpu.dot_dimension_numbers<[1], [0], [0], [1], [0, 0, 1, 1], [], []>} : vector<80x32xbf16>, vector<32x32xbf16>, vector<80x32xf32> -> vector<80x32xf32>
    %c0_3 = arith.constant 0 : index
    %c0_4 = arith.constant 0 : index
    %5 = vector.load %arg3[%c0_3, %c0_4] : memref<1x32xf32, #tpu.memory_space<vmem>>, vector<1x32xf32>
    %6 = vector.broadcast %5 : vector<1x32xf32> to vector<80x32xf32>
    %7 = arith.addf %4, %6 : vector<80x32xf32>
    %c0_5 = arith.constant 0 : index
    %c0_6 = arith.constant 0 : index
    %8 = vector.load %arg4[%c0_5, %c0_6] : memref<80x32xf32, #tpu.memory_space<vmem>>, vector<80x32xf32>
    tpu.vector_store %arg4[%c0_5, %c0_6], %7 {strides = array<i32>} : memref<80x32xf32, #tpu.memory_space<vmem>>, vector<80x32xf32>,
    return
  }
  func.func @transform_0(%arg0: i32) -> (i32, i32) {
    %c0_i32 = arith.constant 0 : i32
    %c0_i32_0 = arith.constant 0 : i32
    return %arg0, %c0_i32 : i32, i32
  }
  func.func @transform_1(%arg0: i32) -> (i32, i32) {
    %c0_i32 = arith.constant 0 : i32
    %c0_i32_0 = arith.constant 0 : i32
    %c0_i32_1 = arith.constant 0 : i32
    return %c0_i32, %c0_i32_0 : i32, i32
  }
  func.func @transform_2(%arg0: i32) -> (i32, i32) {
    %c0_i32 = arith.constant 0 : i32
    %c0_i32_0 = arith.constant 0 : i32
    %c0_i32_1 = arith.constant 0 : i32
    return %c0_i32, %c0_i32_0 : i32, i32
  }
  func.func @transform_3(%arg0: i32) -> (i32, i32) {
    %c0_i32 = arith.constant 0 : i32
    %c0_i32_0 = arith.constant 0 : i32
    return %arg0, %c0_i32 : i32, i32
  }
}

</mosaic_0001>

<bundles_post_ra>
// kernel: tpu_custom_call.1
= control target key start
LH: loop header
LB: loop body
LE: loop exit
PB: predicated region body
PF: predicated region fallthrough
CT: control target
= control target key end

     0   :  { %v189_v0 = vmov 0.0   ;;  %vm190_vm0 = vmmov 0   ;;  %vm43_vm1 = vcmask 261120   ;;  %s306_s1 = inlined_call_operand.vmem [shape: f32[32,32], index: 1, kind: input, shape index: {}]   ;;  %s307_s0 = inlined_call_operand.vmem [shape: f32[80,32], index: 0, kind: input, shape index: {}]   ;;  %s308_s2 = inlined_call_operand.vmem [shape: f32[1,32], index: 2, kind: input, shape index: {}]   ;;  %s309_s3 = inlined_call_operand.vmem [shape: f32[80,32], index: 3, kind: output, shape index: {}]  }
   0x1   :  { %159 = vmatprep.subr.bf16.mxu0 %v189_v0  ;;  %v30_v1 = vld [vmem:[%s306_s1] sm:$0xff]  ;;  %v31_v2 = vld [vmem:[%s306_s1 + $0x8] sm:$0xff]  ;;  %183 = vmatprep.subr.bf16.mxu1 %v189_v0  ;;  %v32_v3 = vld [vmem:[%s306_s1 + $0x10] sm:$0xff] }
   0x2   :  { %v34_v4 = vpack.c.bf16 %v31_v2, %v30_v1  ;;  %v33_v5 = vld [vmem:[%s306_s1 + $0x18] sm:$0xff]  ;;  %163 = vmatprep.mubr.msk.bf16.mxu0 %vm190_vm0, %v189_v0  ;;  %175 = vmatprep.mubr.msk.bf16.mxu1 %vm190_vm0, %v189_v0  ;;  %v15_v6 = vld [vmem:[%s307_s0] sm:$0xff]  ;;  %v16_v8 = vld [vmem:[%s307_s0 + $0x8] sm:$0xff] }
   0x3   :  { %v35_v7 = vpack.c.bf16 %v33_v5, %v32_v3  ;;  %v21_v9 = vld [vmem:[%s307_s0 + $0x30] sm:$0xff]  ;;  %v22_v10 = vld [vmem:[%s307_s0 + $0x38] sm:$0xff]  ;;  %v25_v11 = vpack.c.bf16 %v16_v8, %v15_v6  ;;  %v23_v15 = vld [vmem:[%s307_s0 + $0x40] sm:$0xff] }
   0x4   :  { %160 = vmatpush3.bf16.msra.mxu0 %v34_v4  ;;  %185 = vmatpush3.bf16.msra.mxu1 %v34_v4  ;;  %v28_v12 = vpack.c.bf16 %v22_v10, %v21_v9  ;;  %v17_v13 = vld [vmem:[%s307_s0 + $0x10] sm:$0xff]  ;;  %v18_v14 = vld [vmem:[%s307_s0 + $0x18] sm:$0xff]  ;;  %v24_v16 = vld [vmem:[%s307_s0 + $0x48] sm:$0xff] }
   0x5   :  { %161 = vmatprep.subr.bf16.mxu0 %v189_v0  ;;  %184 = vmatprep.subr.bf16.mxu1 %v189_v0  ;;  %v26_v17 = vpack.c.bf16 %v18_v14, %v17_v13  ;;  %v29_v18 = vpack.c.bf16 %v24_v16, %v23_v15  ;;  %v19_v19 = vld [vmem:[%s307_s0 + $0x20] sm:$0xff]  ;;  %v20_v20 = vld [vmem:[%s307_s0 + $0x28] sm:$0xff] }
   0x6   :  { %v27_v21 = vpack.c.bf16 %v20_v20, %v19_v19  ;;  %v146_v22 = vld [vmem:[%s308_s2] ss:$0 sm:$0xff] }
   0x8   :  { %162 = vmatpush3.bf16.msra.mxu0 %v35_v7  ;;  %186 = vmatpush3.bf16.msra.mxu1 %v35_v7 }
   0xb   :  { %164 = vmatmul.mubr.msk.bf16.vlgmr.msra.gmra.mrb[0].mxu0 %vm43_vm1, %v25_v11  ;;  %176 = vmatmul.mubr.msk.bf16.vlgmr.msra.gmra.mrb[0].mxu1 %vm43_vm1, %v28_v12 }
   0xc   :  { %167 = vmatprep.mubr.msk.bf16.mxu0 %vm190_vm0, %v189_v0  ;;  %179 = vmatprep.mubr.msk.bf16.mxu1 %vm190_vm0, %v189_v0 }
  0x13   :  { %168 = vmatmul.mubr.msk.bf16.gmra.mrb[4].mxu0 %vm43_vm1, %v26_v17  ;;  %180 = vmatmul.mubr.msk.bf16.gmra.mrb[4].mxu1 %vm43_vm1, %v29_v18 }
  0x14   :  { %171 = vmatprep.mubr.msk.bf16.mxu0 %vm190_vm0, %v189_v0 }
  0x1b   :  { %172 = vmatmul.mubr.msk.bf16.gmra.mrb[8].mxu0 %vm43_vm1, %v27_v21 }
  0xde   :  { %v93_v23 = vpop.f32.mrb[0].mxu0  ;;  %v117_v24 = vpop.f32.mrb[0].mxu1 }
  0xdf   :  { %v94_v25 = vadd.f32 %v146_v22, %v93_v23  ;;  %v165_v26 = vpop.f32.mrb[1].mxu0  ;;  %v118_v27 = vadd.f32 %v146_v22, %v117_v24  ;;  %v177_v28 = vpop.f32.mrb[1].mxu1 }
  0xe0   :  { %v96_v29 = vpop.f32.mrb[2].mxu0  ;;  %v120_v30 = vpop.f32.mrb[2].mxu1 }
  0xe1   :  { %132 = vst.msk [vmem:[%s309_s3] sm:$0xff] %vm43_vm1, %v94_v25  ;;  %v97_v31 = vadd.f32 %v146_v22, %v96_v29  ;;  %v166_v32 = vpop.f32.mrb[3].mxu0  ;;  %138 = vst.msk [vmem:[%s309_s3 + $0x30] sm:$0xff] %vm43_vm1, %v118_v27  ;;  %v121_v33 = vadd.f32 %v146_v22, %v120_v30  ;;  %v178_v34 = vpop.f32.mrb[3].mxu1 }
  0xe3   :  { %133 = vst.msk [vmem:[%s309_s3 + $0x8] sm:$0xff] %vm43_vm1, %v97_v31  ;;  %139 = vst.msk [vmem:[%s309_s3 + $0x38] sm:$0xff] %vm43_vm1, %v121_v33 }
  0xe6   :  { %v101_v35 = vpop.f32.mrb[4].mxu0  ;;  %v125_v36 = vpop.f32.mrb[4].mxu1 }
  0xe7   :  { %v102_v37 = vadd.f32 %v146_v22, %v101_v35  ;;  %v169_v38 = vpop.f32.mrb[5].mxu0  ;;  %v126_v39 = vadd.f32 %v146_v22, %v125_v36  ;;  %v181_v40 = vpop.f32.mrb[5].mxu1 }
  0xe8   :  { %v104_v41 = vpop.f32.mrb[6].mxu0  ;;  %v128_v42 = vpop.f32.mrb[6].mxu1 }
  0xe9   :  { %134 = vst.msk [vmem:[%s309_s3 + $0x10] sm:$0xff] %vm43_vm1, %v102_v37  ;;  %v105_v43 = vadd.f32 %v146_v22, %v104_v41  ;;  %v170_v44 = vpop.f32.mrb[7].mxu0  ;;  %140 = vst.msk [vmem:[%s309_s3 + $0x40] sm:$0xff] %vm43_vm1, %v126_v39  ;;  %v129_v45 = vadd.f32 %v146_v22, %v128_v42  ;;  %v182_v46 = vpop.f32.mrb[7].mxu1 }
  0xeb   :  { %135 = vst.msk [vmem:[%s309_s3 + $0x18] sm:$0xff] %vm43_vm1, %v105_v43  ;;  %141 = vst.msk [vmem:[%s309_s3 + $0x48] sm:$0xff] %vm43_vm1, %v129_v45 }
  0xee   :  { %v109_v47 = vpop.f32.mrb[8].mxu0 }
  0xef   :  { %v110_v48 = vadd.f32 %v146_v22, %v109_v47  ;;  %v173_v49 = vpop.f32.mrb[9].mxu0 }
  0xf0   :  { %v112_v50 = vpop.f32.mrb[10].mxu0 }
  0xf1   :  { %136 = vst.msk [vmem:[%s309_s3 + $0x20] sm:$0xff] %vm43_vm1, %v110_v48  ;;  %v113_v51 = vadd.f32 %v146_v22, %v112_v50  ;;  %v174_v52 = vpop.f32.mrb[11].mxu0 }
  0xf3   :  { %137 = vst.msk [vmem:[%s309_s3 + $0x28] sm:$0xff] %vm43_vm1, %v113_v51 }

</bundles_post_ra>
